<compile_context>
chip_gen: v6e
topology: v6e:2x2x1
jax: 0.10.0
libtpu: 0.0.40
codegen_flags: <defaults>
</compile_context>

<pallas_src>
import jax
import jax.numpy as jnp
from jax import lax
from jax.experimental import pallas as pl
from jax.experimental.pallas import tpu as pltpu


def _round_up(x, m):
    return (x + m - 1) // m * m


def _pad2d(a, rows, cols):
    pr, pc = rows - a.shape[0], cols - a.shape[1]
    if pr or pc:
        a = jnp.pad(a, ((0, pr), (0, pc)))
    return a


def _w_eff_tile(w_ref, la_ref, lb_ref, mla_ref, mlb_ref, out_dtype):
    """Effective-weight tile: W * (mlb @ mla) + lb @ la  (scale factors pre-folded)."""
    scale = jnp.dot(mlb_ref[...], mla_ref[...],
                    preferred_element_type=jnp.float32)          # (tn, tk)
    lora = jnp.dot(lb_ref[...], la_ref[...],
                   preferred_element_type=jnp.float32)           # (tn, tk)
    w_eff = w_ref[...].astype(jnp.float32) * scale + lora
    return w_eff.astype(out_dtype)


def _lora_kernel_cached(x_ref, w_ref, b_ref, la_ref, lb_ref, mla_ref, mlb_ref,
                        o_ref, acc_ref, wpanel_ref):
    i = pl.program_id(1)                 # M tile (arbitrary -> safe cache key)
    k = pl.program_id(2)                 # K tile (reduction, innermost)
    nk = pl.num_programs(2)

    # Build the effective-weight panel only on the first M tile of this N tile.
    @pl.when(i == 0)
    def _build_panel():
        wpanel_ref[k] = _w_eff_tile(w_ref, la_ref, lb_ref, mla_ref, mlb_ref,
                                    wpanel_ref.dtype)

    # Accumulator init: start from the broadcast bias (drops epilogue add).
    @pl.when(k == 0)
    def _init():
        acc_ref[...] = jnp.broadcast_to(b_ref[...].astype(jnp.float32),
                                        acc_ref.shape)

    # Main GEMM: contract last dims of x(tm,tk) and w_eff(tn,tk) -> (tm,tn).
    acc_ref[...] += lax.dot_general(
        x_ref[...], wpanel_ref[k],
        (((1,), (1,)), ((), ())),
        preferred_element_type=jnp.float32)

    @pl.when(k == nk - 1)
    def _store():
        o_ref[...] = acc_ref[...].astype(o_ref.dtype)


def _lora_kernel_nocache(x_ref, w_ref, b_ref, la_ref, lb_ref, mla_ref, mlb_ref,
                         o_ref, acc_ref):
    # Fallback when the w_eff panel would not fit the VMEM budget: recompute
    # the effective-weight tile every step (still fused / folded).
    k = pl.program_id(2)
    nk = pl.num_programs(2)

    @pl.when(k == 0)
    def _init():
        acc_ref[...] = jnp.broadcast_to(b_ref[...].astype(jnp.float32),
                                        acc_ref.shape)

    w_eff = _w_eff_tile(w_ref, la_ref, lb_ref, mla_ref, mlb_ref, x_ref.dtype)
    acc_ref[...] += lax.dot_general(
        x_ref[...], w_eff, (((1,), (1,)), ((), ())),
        preferred_element_type=jnp.float32)

    @pl.when(k == nk - 1)
    def _store():
        o_ref[...] = acc_ref[...].astype(o_ref.dtype)


def lora_linear(x, weight, bias, lora_a, lora_b, multi_lora_a, multi_lora_b,
                *, rank, scaling_rank):
    """Pallas implementation of LoRALinear.forward (general branch)."""
    orig_shape = x.shape
    n_out, k_in = weight.shape
    x2d = x.reshape(-1, k_in)
    m = x2d.shape[0]
    dtype = x2d.dtype
    itemsize = jnp.dtype(dtype).itemsize

    if bias is None:
        bias = jnp.zeros((n_out,), dtype)

    # Degenerate cases of the general branch: identity scale / zero additive.
    if scaling_rank == 0:
        multi_lora_a = jnp.ones((1, k_in), dtype)
        multi_lora_b = jnp.ones((n_out, 1), dtype)
        scaling_rank = 1
    if rank == 0:
        lora_a = jnp.zeros((1, k_in), dtype)
        lora_b = jnp.zeros((n_out, 1), dtype)
        rank = 1

    # --- Tile selection (dtype-aware sublane rounding, larger caps). ---------
    sublane = {4: 8, 2: 16, 1: 32}.get(itemsize, 8)
    tm = min(512, _round_up(m, sublane))
    tn = min(256, _round_up(n_out, 128))
    tk = min(512, _round_up(k_in, 128))
    kp = _round_up(k_in, tk)

    # w_eff panel budget (fits v7x's 64 MiB VMEM comfortably).
    PANEL_BUDGET = 12 * 1024 * 1024
    panel_bytes = kp * tn * itemsize
    if panel_bytes > PANEL_BUDGET and tn > 128:
        tn = 128
        panel_bytes = kp * tn * itemsize
    use_panel = panel_bytes <= PANEL_BUDGET

    mp = _round_up(m, tm)
    np_ = _round_up(n_out, tn)
    rp = _round_up(lora_a.shape[0], 8)
    sp = _round_up(multi_lora_a.shape[0], 8)
    nk = kp // tk

    # --- Zero-pad to tile multiples; fold constant scales into the B factors.
    x_p = _pad2d(x2d, mp, kp)
    w_p = _pad2d(weight, np_, kp)
    b_p = _pad2d(bias.reshape(1, n_out), 1, np_)
    la_p = _pad2d(lora_a, rp, kp)
    lb_p = _pad2d(lora_b / float(rank), np_, rp)                 # fold 1/rank
    mla_p = _pad2d(multi_lora_a, sp, kp)
    mlb_p = _pad2d(multi_lora_b / float(scaling_rank), np_, sp)  # fold 1/scaling_rank

    grid = (np_ // tn, mp // tm, nk)      # (j, i, k): N parallel, M/K arbitrary

    if use_panel:
        # For i > 0 the body never reads W / lora_a / multi_lora_a -> pin their
        # block index so the pipeline skips the (identical-index) re-fetches.
        w_map = lambda j, i, k: (j, jnp.where(i == 0, k, 0))
        la_map = lambda j, i, k: (0, jnp.where(i == 0, k, 0))
        mla_map = lambda j, i, k: (0, jnp.where(i == 0, k, 0))
        kernel = _lora_kernel_cached
        scratch = [pltpu.VMEM((tm, tn), jnp.float32),
                   pltpu.VMEM((nk, tn, tk), dtype)]
    else:
        w_map = lambda j, i, k: (j, k)
        la_map = lambda j, i, k: (0, k)
        mla_map = lambda j, i, k: (0, k)
        kernel = _lora_kernel_nocache
        scratch = [pltpu.VMEM((tm, tn), jnp.float32)]

    in_specs = [
        pl.BlockSpec((tm, tk), lambda j, i, k: (i, k)),   # x
        pl.BlockSpec((tn, tk), w_map),                    # W (row-major, no transpose)
        pl.BlockSpec((1, tn), lambda j, i, k: (0, j)),    # bias
        pl.BlockSpec((rp, tk), la_map),                   # lora_a
        pl.BlockSpec((tn, rp), lambda j, i, k: (j, 0)),   # lora_b   (pre-scaled)
        pl.BlockSpec((sp, tk), mla_map),                  # multi_lora_a
        pl.BlockSpec((tn, sp), lambda j, i, k: (j, 0)),   # multi_lora_b (pre-scaled)
    ]
    out_spec = pl.BlockSpec((tm, tn), lambda j, i, k: (i, j))

    # Explicit VMEM budget (double-buffered blocks + scratch), capped for v7x.
    blk_bytes = 2 * itemsize * (tm * tk + tn * tk + tn + rp * tk + tn * rp
                                + sp * tk + tn * sp + tm * tn)
    scratch_bytes = tm * tn * 4 + (panel_bytes if use_panel else 0)
    vmem_need = blk_bytes + scratch_bytes
    vmem_limit = int(min(64 * 1024 * 1024,
                         max(32 * 1024 * 1024, vmem_need * 5 // 4 + (4 << 20))))

    cost = pl.CostEstimate(
        flops=2 * m * n_out * k_in
              + 2 * n_out * k_in * (rank + scaling_rank)
              + m * n_out,
        transcendentals=0,
        bytes_accessed=itemsize * (m * k_in + n_out * k_in + m * n_out),
    )

    out = pl.pallas_call(
        kernel,
        out_shape=jax.ShapeDtypeStruct((mp, np_), dtype),
        grid_spec=pltpu.PrefetchScalarGridSpec(
            num_scalar_prefetch=0,
            grid=grid,
            in_specs=in_specs,
            out_specs=out_spec,
            scratch_shapes=scratch,
        ),
        compiler_params=pltpu.CompilerParams(
            dimension_semantics=("parallel", "arbitrary", "arbitrary"),
            vmem_limit_bytes=vmem_limit,
        ),
        cost_estimate=cost,
    )(x_p, w_p, b_p, la_p, lb_p, mla_p, mlb_p)

    return out[:m, :n_out].reshape(*orig_shape[:-1], n_out)


def lora_linear_ref(x, weight, bias, lora_a, lora_b, multi_lora_a,
                    multi_lora_b, *, rank, scaling_rank):
    """Pure-JAX reference mirroring the PyTorch forward (general branch)."""
    w = weight
    if scaling_rank:
        w = w * (multi_lora_b @ multi_lora_a) / scaling_rank
    if rank:
        w = w + (lora_b @ lora_a) / rank
    return x @ w.T + bias


if __name__ == "__main__":
    # Module configuration (synthetic, deterministic init).
    in_features = 32
    out_features = 32
    rank = 4
    scaling_rank = 2
    init_scale = -0.05  # < 0 branch: lora_b and multi_lora_b get random init

    key = jax.random.PRNGKey(0)
    k = jax.random.split(key, 8)

    # nn.Linear parameters
    weight = jax.random.normal(k[0], (out_features, in_features), jnp.float32) * 0.1
    bias = jax.random.normal(k[1], (out_features,), jnp.float32) * 0.1

    # LoRA parameters (per __init__, init_scale < 0 path)
    lora_a = jax.random.normal(k[2], (rank, in_features), jnp.float32) * init_scale
    lora_b = jax.random.normal(k[3], (out_features, rank), jnp.float32) * init_scale
    multi_lora_a = (jnp.ones((scaling_rank, in_features), jnp.float32)
                    + jax.random.normal(k[4], (scaling_rank, in_features),
                                        jnp.float32) * init_scale)
    multi_lora_b = (jnp.ones((out_features, scaling_rank), jnp.float32)
                    + jax.random.normal(k[5], (out_features, scaling_rank),
                                        jnp.float32) * init_scale)

    # Input: [batch=2, seq=8, hidden=32]
    x = jax.random.normal(k[6], (2, 8, in_features), jnp.float32)

    y = lora_linear(x, weight, bias, lora_a, lora_b, multi_lora_a,
                    multi_lora_b, rank=rank, scaling_rank=scaling_rank)
    y = jax.block_until_ready(y)

    y_ref = lora_linear_ref(x, weight, bias, lora_a, lora_b, multi_lora_a,
                            multi_lora_b, rank=rank, scaling_rank=scaling_rank)

    assert y.shape == (2, 8, out_features), y.shape
    assert jnp.allclose(y, y_ref, atol=1e-5, rtol=1e-5), \
        float(jnp.max(jnp.abs(y - y_ref)))

    # TODO(synk): the fast path (scaling_rank==1 and rank==0) gates on
    # requires_grad flags (autograd state) which has no Pallas equivalent;
    # only the general else-branch math is implemented here.
    print("KERNEL_OK")
</pallas_src>

<mosaic_0001>
module attributes {stable_mosaic.version = 11 : i64} {
  func.func @_lora_kernel_cached(%arg0: i32, %arg1: i32, %arg2: i32, %arg3: memref<16x128xf32, #tpu.memory_space<vmem>>, %arg4: memref<128x128xf32, #tpu.memory_space<vmem>>, %arg5: memref<1x128xf32, #tpu.memory_space<vmem>>, %arg6: memref<8x128xf32, #tpu.memory_space<vmem>>, %arg7: memref<128x8xf32, #tpu.memory_space<vmem>>, %arg8: memref<8x128xf32, #tpu.memory_space<vmem>>, %arg9: memref<128x8xf32, #tpu.memory_space<vmem>>, %arg10: memref<16x128xf32, #tpu.memory_space<vmem>>, %arg11: memref<16x128xf32, #tpu.memory_space<vmem>>, %arg12: memref<1x128x128xf32, #tpu.memory_space<vmem>>) attributes {dimension_semantics = [#tpu.dimension_semantics<parallel>, #tpu.dimension_semantics<arbitrary>, #tpu.dimension_semantics<arbitrary>], iteration_bounds = array<i64: 1, 1, 1>, scalar_prefetch = 0 : i64, scratch_operands = 2 : i64, tpu.core_type = #tpu.core_type<tc>, window_params = [{transform_indices = @transform_0, window_bounds = array<i64: 16, 128>}, {transform_indices = @transform_1, window_bounds = array<i64: 128, 128>}, {transform_indices = @transform_2, window_bounds = array<i64: 1, 128>}, {transform_indices = @transform_3, window_bounds = array<i64: 8, 128>}, {transform_indices = @transform_4, window_bounds = array<i64: 128, 8>}, {transform_indices = @transform_5, window_bounds = array<i64: 8, 128>}, {transform_indices = @transform_6, window_bounds = array<i64: 128, 8>}, {transform_indices = @transform_7, window_bounds = array<i64: 16, 128>}]} {
    %c0_i32 = arith.constant 0 : i32
    %0 = arith.cmpi eq, %arg1, %c0_i32 : i32
    %1 = arith.extui %0 : i1 to i32
    %c0_i32_0 = arith.constant 0 : i32
    %2 = arith.cmpi ne, %1, %c0_i32_0 : i32
    scf.if %2 {
      %c0_12 = arith.constant 0 : index
      %c0_13 = arith.constant 0 : index
      %17 = vector.load %arg9[%c0_12, %c0_13] : memref<128x8xf32, #tpu.memory_space<vmem>>, vector<128x8xf32>
      %c0_14 = arith.constant 0 : index
      %c0_15 = arith.constant 0 : index
      %18 = vector.load %arg8[%c0_14, %c0_15] : memref<8x128xf32, #tpu.memory_space<vmem>>, vector<8x128xf32>
      %cst_16 = arith.constant dense<0.000000e+00> : vector<128x128xf32>
      %19 = tpu.matmul %17, %18, %cst_16 {dimension_numbers = #tpu.dot_dimension_numbers<[1], [0], [0], [1], [0, 0, 1, 1], [], []>} : vector<128x8xf32>, vector<8x128xf32>, vector<128x128xf32> -> vector<128x128xf32>
      %c0_17 = arith.constant 0 : index
      %c0_18 = arith.constant 0 : index
      %20 = vector.load %arg7[%c0_17, %c0_18] : memref<128x8xf32, #tpu.memory_space<vmem>>, vector<128x8xf32>
      %c0_19 = arith.constant 0 : index
      %c0_20 = arith.constant 0 : index
      %21 = vector.load %arg6[%c0_19, %c0_20] : memref<8x128xf32, #tpu.memory_space<vmem>>, vector<8x128xf32>
      %cst_21 = arith.constant dense<0.000000e+00> : vector<128x128xf32>
      %22 = tpu.matmul %20, %21, %cst_21 {dimension_numbers = #tpu.dot_dimension_numbers<[1], [0], [0], [1], [0, 0, 1, 1], [], []>} : vector<128x8xf32>, vector<8x128xf32>, vector<128x128xf32> -> vector<128x128xf32>
      %c0_22 = arith.constant 0 : index
      %c0_23 = arith.constant 0 : index
      %23 = vector.load %arg4[%c0_22, %c0_23] : memref<128x128xf32, #tpu.memory_space<vmem>>, vector<128x128xf32>
      %24 = arith.mulf %23, %19 : vector<128x128xf32>
      %25 = arith.addf %24, %22 : vector<128x128xf32>
      %26 = arith.index_cast %arg2 : i32 to index
      %c0_24 = arith.constant 0 : index
      %c0_25 = arith.constant 0 : index
      %27 = vector.load %arg12[%26, %c0_24, %c0_25] : memref<1x128x128xf32, #tpu.memory_space<vmem>>, vector<1x128x128xf32>
      %28 = vector.shape_cast %27 : vector<1x128x128xf32> to vector<128x128xf32>
      %29 = vector.shape_cast %25 : vector<128x128xf32> to vector<1x128x128xf32>
      tpu.vector_store %arg12[%26, %c0_24, %c0_25], %29 {strides = array<i32>} : memref<1x128x128xf32, #tpu.memory_space<vmem>>, vector<1x128x128xf32>,
    } else {
    }
    %c0_i32_1 = arith.constant 0 : i32
    %3 = arith.cmpi eq, %arg2, %c0_i32_1 : i32
    %4 = arith.extui %3 : i1 to i32
    %c0_i32_2 = arith.constant 0 : i32
    %5 = arith.cmpi ne, %4, %c0_i32_2 : i32
    scf.if %5 {
      %c0_12 = arith.constant 0 : index
      %c0_13 = arith.constant 0 : index
      %17 = vector.load %arg5[%c0_12, %c0_13] : memref<1x128xf32, #tpu.memory_space<vmem>>, vector<1x128xf32>
      %18 = vector.shape_cast %17 : vector<1x128xf32> to vector<1x128xf32>
      %19 = vector.broadcast %18 : vector<1x128xf32> to vector<16x128xf32>
      %c0_14 = arith.constant 0 : index
      %c0_15 = arith.constant 0 : index
      %20 = vector.load %arg11[%c0_14, %c0_15] : memref<16x128xf32, #tpu.memory_space<vmem>>, vector<16x128xf32>
      tpu.vector_store %arg11[%c0_14, %c0_15], %19 {strides = array<i32>} : memref<16x128xf32, #tpu.memory_space<vmem>>, vector<16x128xf32>,
    } else {
    }
    %c0 = arith.constant 0 : index
    %c0_3 = arith.constant 0 : index
    %6 = vector.load %arg11[%c0, %c0_3] : memref<16x128xf32, #tpu.memory_space<vmem>>, vector<16x128xf32>
    %c0_4 = arith.constant 0 : index
    %c0_5 = arith.constant 0 : index
    %7 = vector.load %arg3[%c0_4, %c0_5] : memref<16x128xf32, #tpu.memory_space<vmem>>, vector<16x128xf32>
    %8 = arith.index_cast %arg2 : i32 to index
    %c0_6 = arith.constant 0 : index
    %c0_7 = arith.constant 0 : index
    %9 = vector.load %arg12[%8, %c0_6, %c0_7] : memref<1x128x128xf32, #tpu.memory_space<vmem>>, vector<1x128x128xf32>
    %10 = vector.shape_cast %9 : vector<1x128x128xf32> to vector<128x128xf32>
    %cst = arith.constant dense<0.000000e+00> : vector<16x128xf32>
    %11 = tpu.matmul %7, %10, %cst {dimension_numbers = #tpu.dot_dimension_numbers<[1], [1], [0], [0], [0, 0, 1, 0], [], []>} : vector<16x128xf32>, vector<128x128xf32>, vector<16x128xf32> -> vector<16x128xf32>
    %12 = arith.addf %6, %11 : vector<16x128xf32>
    %c0_8 = arith.constant 0 : index
    %c0_9 = arith.constant 0 : index
    %13 = vector.load %arg11[%c0_8, %c0_9] : memref<16x128xf32, #tpu.memory_space<vmem>>, vector<16x128xf32>
    tpu.vector_store %arg11[%c0_8, %c0_9], %12 {strides = array<i32>} : memref<16x128xf32, #tpu.memory_space<vmem>>, vector<16x128xf32>,
    %c0_i32_10 = arith.constant 0 : i32
    %14 = arith.cmpi eq, %arg2, %c0_i32_10 : i32
    %15 = arith.extui %14 : i1 to i32
    %c0_i32_11 = arith.constant 0 : i32
    %16 = arith.cmpi ne, %15, %c0_i32_11 : i32
    scf.if %16 {
      %c0_12 = arith.constant 0 : index
      %c0_13 = arith.constant 0 : index
      %17 = vector.load %arg11[%c0_12, %c0_13] : memref<16x128xf32, #tpu.memory_space<vmem>>, vector<16x128xf32>
      %c0_14 = arith.constant 0 : index
      %c0_15 = arith.constant 0 : index
      %18 = vector.load %arg10[%c0_14, %c0_15] : memref<16x128xf32, #tpu.memory_space<vmem>>, vector<16x128xf32>
      tpu.vector_store %arg10[%c0_14, %c0_15], %17 {strides = array<i32>} : memref<16x128xf32, #tpu.memory_space<vmem>>, vector<16x128xf32>,
    } else {
    }
    return
  }
  func.func @transform_0(%arg0: i32, %arg1: i32, %arg2: i32) -> (i32, i32) {
    %c0_i32 = arith.constant 0 : i32
    return %arg1, %arg2 : i32, i32
  }
  func.func @transform_1(%arg0: i32, %arg1: i32, %arg2: i32) -> (i32, i32) {
    %c0_i32 = arith.constant 0 : i32
    %0 = arith.cmpi eq, %arg1, %c0_i32 : i32
    %c0_i32_0 = arith.constant 0 : i32
    %1 = arith.select %0, %arg2, %c0_i32_0 : i32
    %c0_i32_1 = arith.constant 0 : i32
    return %arg0, %1 : i32, i32
  }
  func.func @transform_2(%arg0: i32, %arg1: i32, %arg2: i32) -> (i32, i32) {
    %c0_i32 = arith.constant 0 : i32
    %c0_i32_0 = arith.constant 0 : i32
    return %c0_i32, %arg0 : i32, i32
  }
  func.func @transform_3(%arg0: i32, %arg1: i32, %arg2: i32) -> (i32, i32) {
    %c0_i32 = arith.constant 0 : i32
    %0 = arith.cmpi eq, %arg1, %c0_i32 : i32
    %c0_i32_0 = arith.constant 0 : i32
    %1 = arith.select %0, %arg2, %c0_i32_0 : i32
    %c0_i32_1 = arith.constant 0 : i32
    %c0_i32_2 = arith.constant 0 : i32
    return %c0_i32_1, %1 : i32, i32
  }
  func.func @transform_4(%arg0: i32, %arg1: i32, %arg2: i32) -> (i32, i32) {
    %c0_i32 = arith.constant 0 : i32
    %c0_i32_0 = arith.constant 0 : i32
    return %arg0, %c0_i32 : i32, i32
  }
  func.func @transform_5(%arg0: i32, %arg1: i32, %arg2: i32) -> (i32, i32) {
    %c0_i32 = arith.constant 0 : i32
    %0 = arith.cmpi eq, %arg1, %c0_i32 : i32
    %c0_i32_0 = arith.constant 0 : i32
    %1 = arith.select %0, %arg2, %c0_i32_0 : i32
    %c0_i32_1 = arith.constant 0 : i32
    %c0_i32_2 = arith.constant 0 : i32
    return %c0_i32_1, %1 : i32, i32
  }
  func.func @transform_6(%arg0: i32, %arg1: i32, %arg2: i32) -> (i32, i32) {
    %c0_i32 = arith.constant 0 : i32
    %c0_i32_0 = arith.constant 0 : i32
    return %arg0, %c0_i32 : i32, i32
  }
  func.func @transform_7(%arg0: i32, %arg1: i32, %arg2: i32) -> (i32, i32) {
    %c0_i32 = arith.constant 0 : i32
    return %arg1, %arg0 : i32, i32
  }
}

</mosaic_0001>

<bundles_post_ra>
// kernel: tpu_custom_call.1
= control target key start
LH: loop header
LB: loop body
LE: loop exit
PB: predicated region body
PF: predicated region fallthrough
CT: control target
= control target key end

     0   :  { %vm114_vm0 = vcmask 64512   ;;  %s1213_s0 = inlined_call_operand.vmem [shape: f32[16,128], index: 0, kind: input, shape index: {}]   ;;  %s1214_s1 = inlined_call_operand.vmem [shape: f32[128,128], index: 1, kind: input, shape index: {}]   ;;  %s1215_s2 = inlined_call_operand.vmem [shape: f32[1,128], index: 2, kind: input, shape index: {}]   ;;  %s1216_s3 = inlined_call_operand.vmem [shape: f32[8,128], index: 3, kind: input, shape index: {}]   ;;  %s1217_s4 = inlined_call_operand.vmem [shape: f32[128,8], index: 4, kind: input, shape index: {}]   ;;  %s1218_s5 = inlined_call_operand.vmem [shape: f32[8,128], index: 5, kind: input, shape index: {}]   ;;  %s1219_s6 = inlined_call_operand.vmem [shape: f32[128,8], index: 6, kind: input, shape index: {}]   ;;  %s1220_s7 = inlined_call_operand.hbm [shape: f32[16,128], index: 7, kind: output, shape index: {}]  }
   0x1   :  { %v113_v0 = vld [vmem:[%s1218_s5] sm:$0xff]  ;;  %v98_v2 = vld [vmem:[%s1219_s6 + $0x8] sm:$0xff]  ;;  %v99_v4 = vld [vmem:[%s1219_s6 + $0x10] sm:$0xff] }
   0x2   :  { %v97_v1 = vld [vmem:[%s1219_s6] sm:$0xff]  ;;  %824 = vmatprep.subr.mxu1 %v113_v0  ;;  %v100_v5 = vld [vmem:[%s1219_s6 + $0x18] sm:$0xff]  ;;  %v102_v7 = vld [vmem:[%s1219_s6 + $0x28] sm:$0xff] }
   0x3   :  { %826 = vmatprep.mubr.msk.f32.mxu1 %vm114_vm0, %v97_v1  ;;  %v324_v3 = vld [vmem:[%s1216_s3] sm:$0xff]  ;;  %825 = vmatpush3.msra.mxu1 %v113_v0  ;;  %v103_v8 = vld [vmem:[%s1219_s6 + $0x30] sm:$0xff] }
   0x4   :  { %827 = vmatmul.mubr.msk.f32.vlgmr.msra.gmra.mxu1 %vm114_vm0, %v98_v2  ;;  %850 = vmatprep.subr.mxu1 %v324_v3  ;;  %v101_v6 = vld [vmem:[%s1219_s6 + $0x20] sm:$0xff] }
   0x5   :  { %851 = vmatpush3.msra.mxu1 %v324_v3  ;;  %829 = vmatprep.mubr.msk.f32.mxu1 %vm114_vm0, %v99_v4 }
   0x8   :  { %830 = vmatmul.mubr.msk.f32.gmra.mxu1 %vm114_vm0, %v100_v5 }
   0x9   :  { %832 = vmatprep.mubr.msk.f32.mxu1 %vm114_vm0, %v101_v6 }
   0xc   :  { %833 = vmatmul.mubr.msk.f32.gmra.mxu1 %vm114_vm0, %v102_v7 }
   0xd   :  { %12 = vsyncpa [#allocation5], 0  ;;  %835 = vmatprep.mubr.msk.f32.mxu1 %vm114_vm0, %v103_v8  ;;  %v104_v9 = vld [vmem:[%s1219_s6 + $0x38] sm:$0xff]  ;;  %v105_v10 = vld [vmem:[%s1219_s6 + $0x40] sm:$0xff]  ;;  %s936_s24 = smov [#allocation4]  }
   0xe   :  { %v106_v11 = vld [vmem:[%s1219_s6 + $0x48] sm:$0xff]  ;;  %v107_v12 = vld [vmem:[%s1219_s6 + $0x50] sm:$0xff]  ;;  %v108_v13 = vld [vmem:[%s1219_s6 + $0x58] sm:$0xff]  ;;  %s710_s25 = sshll.u32 %s936_s24, 4  ;;  %s711_s25 = int_to_ptr.vmem [resolvable:$true] %s710_s25 }
   0xf   :  { %v109_v14 = vld [vmem:[%s1219_s6 + $0x60] sm:$0xff]  ;;  %v110_v15 = vld [vmem:[%s1219_s6 + $0x68] sm:$0xff]  ;;  %v111_v16 = vld [vmem:[%s1219_s6 + $0x70] sm:$0xff]  ;;  %s914_s26 = scalar_lea.vmem %s711_s25, 256  ;;  %p919_p1 = scmp.lt.s32.totalorder %s711_s25, %s711_s25 }
  0x10   :  { %836 = vmatmul.mubr.msk.f32.gmra.mxu1 %vm114_vm0, %v104_v9  ;;  %v112_v17 = vld [vmem:[%s1219_s6 + $0x78] sm:$0xff]  ;;  %v308_v18 = vld [vmem:[%s1217_s4] sm:$0xff]  ;;  %v309_v19 = vld [vmem:[%s1217_s4 + $0x8] sm:$0xff]  ;;  %p915_p0 = scmp.ne.s32.totalorder %s711_s25, %s914_s26  ;;  %p920_p2 = scmp.lt.s32.totalorder %s914_s26, %s914_s26 }
  0x11   :  { %838 = vmatprep.mubr.msk.f32.mxu1 %vm114_vm0, %v105_v10  ;;  %v310_v20 = vld [vmem:[%s1217_s4 + $0x10] sm:$0xff]  ;;  %v311_v21 = vld [vmem:[%s1217_s4 + $0x18] sm:$0xff]  ;;  %v312_v22 = vld [vmem:[%s1217_s4 + $0x20] sm:$0xff] }
  0x12   :  { %v313_v23 = vld [vmem:[%s1217_s4 + $0x28] sm:$0xff]  ;;  %v314_v24 = vld [vmem:[%s1217_s4 + $0x30] sm:$0xff]  ;;  %v315_v25 = vld [vmem:[%s1217_s4 + $0x38] sm:$0xff]  ;;  %p921_p3 = por %p920_p2, %p919_p1 }
  0x13   :  { %v316_v26 = vld [vmem:[%s1217_s4 + $0x40] sm:$0xff]  ;;  %v317_v27 = vld [vmem:[%s1217_s4 + $0x48] sm:$0xff]  ;;  %v318_v28 = vld [vmem:[%s1217_s4 + $0x50] sm:$0xff] }
  0x14   :  { %839 = vmatmul.mubr.msk.f32.gmra.mxu1 %vm114_vm0, %v106_v11  ;;  %v319_v29 = vld [vmem:[%s1217_s4 + $0x58] sm:$0xff]  ;;  %v320_v30 = vld [vmem:[%s1217_s4 + $0x60] sm:$0xff]  ;;  %v321_v31 = vld [vmem:[%s1217_s4 + $0x68] sm:$0xff]  ;;  %p922_p4 = pnand %p921_p3, %p915_p0 }
  0x15   :  { %841 = vmatprep.mubr.msk.f32.mxu1 %vm114_vm0, %v107_v12  ;;  %v322_v32 = vld [vmem:[%s1217_s4 + $0x70] sm:$0xff]  ;;  %v323_v33 = vld [vmem:[%s1217_s4 + $0x78] sm:$0xff]  ;;  %v599_v34 = vld [vmem:[%s1213_s0] sm:$0xff] }
  0x16   :  { %908 = vmatprep.mubr.f32.mxu0 %v599_v34  ;;  %v519_v49 = vld [vmem:[%s1214_s1 + $0x8] sm:$0xff]  ;;  %v518_v51 = vld [vmem:[%s1214_s1] sm:$0xff]  ;;  %v521_v54 = vld [vmem:[%s1214_s1 + $0x18] sm:$0xff] }
  0x17   :  { %v520_v58 = vld [vmem:[%s1214_s1 + $0x10] sm:$0xff]  ;;  %v533_v11 = vld [vmem:[%s1214_s1 + $0x78] sm:$0xff] }
  0x18   :  { %842 = vmatmul.mubr.msk.f32.gmra.mxu1 %vm114_vm0, %v108_v13  ;;  %v532_v13 = vld [vmem:[%s1214_s1 + $0x70] sm:$0xff] }
  0x19   :  { %844 = vmatprep.mubr.msk.f32.mxu1 %vm114_vm0, %v109_v14 }
  0x1c   :  { %845 = vmatmul.mubr.msk.f32.gmra.mxu1 %vm114_vm0, %v110_v15 }
  0x1d   :  { %847 = vmatprep.mubr.msk.f32.mxu1 %vm114_vm0, %v111_v16 }
  0x20   :  { %848 = vmatmul.mubr.msk.f32.gmra.mxu1 %vm114_vm0, %v112_v17 }
  0x21   :  { %852 = vmatprep.mubr.msk.f32.mxu1 %vm114_vm0, %v308_v18 }
  0x24   :  { %853 = vmatmul.mubr.msk.f32.vlgmr.msra.gmra.mxu1 %vm114_vm0, %v309_v19  ;;  %v531_v19 = vld [vmem:[%s1214_s1 + $0x68] sm:$0xff] }
  0x25   :  { %855 = vmatprep.mubr.msk.f32.mxu1 %vm114_vm0, %v310_v20 }
  0x28   :  { %856 = vmatmul.mubr.msk.f32.gmra.mxu1 %vm114_vm0, %v311_v21 }
  0x29   :  { %858 = vmatprep.mubr.msk.f32.mxu1 %vm114_vm0, %v312_v22 }
  0x2c   :  { %859 = vmatmul.mubr.msk.f32.gmra.mxu1 %vm114_vm0, %v313_v23  ;;  %v530_v23 = vld [vmem:[%s1214_s1 + $0x60] sm:$0xff] }
  0x2d   :  { %861 = vmatprep.mubr.msk.f32.mxu1 %vm114_vm0, %v314_v24 }
  0x30   :  { %862 = vmatmul.mubr.msk.f32.gmra.mxu1 %vm114_vm0, %v315_v25 }
  0x31   :  { %864 = vmatprep.mubr.msk.f32.mxu1 %vm114_vm0, %v316_v26  ;;  %v529_v26 = vld [vmem:[%s1214_s1 + $0x58] sm:$0xff] }
  0x34   :  { %865 = vmatmul.mubr.msk.f32.gmra.mxu1 %vm114_vm0, %v317_v27 }
  0x35   :  { %867 = vmatprep.mubr.msk.f32.mxu1 %vm114_vm0, %v318_v28 }
  0x38   :  { %868 = vmatmul.mubr.msk.f32.gmra.mxu1 %vm114_vm0, %v319_v29  ;;  %v528_v29 = vld [vmem:[%s1214_s1 + $0x50] sm:$0xff] }
  0x39   :  { %870 = vmatprep.mubr.msk.f32.mxu1 %vm114_vm0, %v320_v30 }
  0x3c   :  { %871 = vmatmul.mubr.msk.f32.gmra.mxu1 %vm114_vm0, %v321_v31 }
  0x3d   :  { %873 = vmatprep.mubr.msk.f32.mxu1 %vm114_vm0, %v322_v32  ;;  %v527_v32 = vld [vmem:[%s1214_s1 + $0x48] sm:$0xff] }
  0x40   :  { %874 = vmatmul.mubr.msk.f32.gmra.mxu1 %vm114_vm0, %v323_v33 }
  0xc4   :  { %v828_v35 = vpop.f32.mrf.mxu1 }
  0xc5   :  { %v535_v53 = vmul.f32 %v828_v35, %v519_v49  ;;  %v526_v35 = vld [vmem:[%s1214_s1 + $0x40] sm:$0xff] }
  0xc6   :  { %v229_v36 = vpop.f32.mrf.mxu1 }
  0xc7   :  { %v534_v56 = vmul.f32 %v518_v51, %v229_v36 }
  0xc8   :  { %v831_v37 = vpop.f32.mrf.mxu1 }
  0xc9   :  { %v537_v60 = vmul.f32 %v831_v37, %v521_v54 }
  0xca   :  { %v239_v38 = vpop.f32.mrf.mxu1 }
  0xcb   :  { %v536_v63 = vmul.f32 %v520_v58, %v239_v38  ;;  %v525_v38 = vld [vmem:[%s1214_s1 + $0x38] sm:$0xff] }
  0xcc   :  { %v1116_v39 = vpop.f32.mrf.mxu1 }
  0xce   :  { %v1118_v40 = vpop.f32.mrf.mxu1 }
  0xd0   :  { %v1120_v41 = vpop.f32.mrf.mxu1 }
  0xd2   :  { %v1122_v42 = vpop.f32.mrf.mxu1 }
  0xd4   :  { %v1124_v43 = vpop.f32.mrf.mxu1 }
  0xd5   :  { %v543_v34 = vmul.f32 %v1124_v43, %v527_v32  ;;  %v524_v43 = vld [vmem:[%s1214_s1 + $0x30] sm:$0xff] }
  0xd6   :  { %v1126_v44 = vpop.f32.mrf.mxu1 }
  0xd7   :  { %v542_v37 = vmul.f32 %v526_v35, %v1126_v44  ;;  %v523_v44 = vld [vmem:[%s1214_s1 + $0x28] sm:$0xff] }
  0xd8   :  { %v843_v45 = vpop.f32.mrf.mxu1 }
  0xd9   :  { %v545_v28 = vmul.f32 %v843_v45, %v529_v26 }
  0xda   :  { %v279_v46 = vpop.f32.mrf.mxu1 }
  0xdb   :  { %v544_v31 = vmul.f32 %v528_v29, %v279_v46  ;;  %v541_v46 = vmul.f32 %v1120_v41, %v525_v38  ;;  %v522_v41 = vld [vmem:[%s1214_s1 + $0x20] sm:$0xff] }
  0xdc   :  { %v846_v47 = vpop.f32.mrf.mxu1 }
  0xdd   :  { %v547_v22 = vmul.f32 %v846_v47, %v531_v19 }
  0xde   :  { %v289_v48 = vpop.f32.mrf.mxu1 }
  0xdf   :  { %v546_v25 = vmul.f32 %v530_v23, %v289_v48  ;;  %v540_v48 = vmul.f32 %v524_v43, %v1122_v42 }
  0xe0   :  { %v849_v50 = vpop.f32.mrf.mxu1 }
  0xe1   :  { %v549_v15 = vmul.f32 %v849_v50, %v533_v11  ;;  %v539_v50 = vmul.f32 %v1116_v39, %v523_v44  ;;  %v600_v39 = vld [vmem:[%s1213_s0 + $0x8] sm:$0xff] }
  0xe2   :  { %v299_v52 = vpop.f32.mrf.mxu1 }
  0xe3   :  { %v548_v17 = vmul.f32 %v532_v13, %v299_v52  ;;  %v538_v52 = vmul.f32 %v522_v41, %v1118_v40  ;;  %v771_v40 = vld [vmem:[%s1215_s2] ss:$0 sm:$0xff] }
  0xe4   :  { %v854_v55 = vpop.f32.mrf.mxu1 }
  0xe5   :  { %v1137_v57 = vadd.f32 %v854_v55, %v535_v53 }
  0xe6   :  { %v439_v59 = vpop.f32.mrf.mxu1 }
  0xe7   :  { %v1142_v61 = vadd.f32 %v534_v56, %v439_v59 }
  0xe8   :  { %v857_v62 = vpop.f32.mrf.mxu1 }
  0xe9   :  { %v1144_v0 = vadd.f32 %v857_v62, %v537_v60 }
  0xea   :  { %v449_v1 = vpop.f32.mrf.mxu1 }
  0xeb   :  { %v1146_v2 = vadd.f32 %v536_v63, %v449_v1 }
  0xec   :  { %v1148_v3 = vpop.f32.mrf.mxu1 }
  0xed   :  { %v555_v51 = vadd.f32 %v1148_v3, %v539_v50 }
  0xee   :  { %v1150_v4 = vpop.f32.mrf.mxu1 }
  0xef   :  { %v554_v42 = vadd.f32 %v538_v52, %v1150_v4 }
  0xf0   :  { %v863_v5 = vpop.f32.mrf.mxu1 }
  0xf1   :  { %v557_v47 = vadd.f32 %v863_v5, %v541_v46 }
  0xf2   :  { %v469_v6 = vpop.f32.mrf.mxu1 }
  0xf3   :  { %v556_v49 = vadd.f32 %v540_v48, %v469_v6 }
  0xf4   :  { %v866_v7 = vpop.f32.mrf.mxu1 }
  0xf5   :  { %v559_v36 = vadd.f32 %v866_v7, %v543_v34 }
  0xf6   :  { %v479_v8 = vpop.f32.mrf.mxu1 }
  0xf7   :  { %v558_v45 = vadd.f32 %v542_v37, %v479_v8 }
  0xf8   :  { %v869_v9 = vpop.f32.mrf.mxu1 }
  0xf9   :  { %v561_v30 = vadd.f32 %v869_v9, %v545_v28 }
  0xfa   :  { %v489_v10 = vpop.f32.mrf.mxu1 }
  0xfb   :  { %v560_v33 = vadd.f32 %v544_v31, %v489_v10 }
  0xfc   :  { %v872_v12 = vpop.f32.mrf.mxu1 }
  0xfd   :  { %v563_v24 = vadd.f32 %v872_v12, %v547_v22 }
  0xfe   :  { %v499_v14 = vpop.f32.mrf.mxu1 }
  0xff   :  { %v562_v27 = vadd.f32 %v546_v25, %v499_v14 }
 0x100   :  { %v875_v16 = vpop.f32.mrf.mxu1 }
 0x101   :  { %v565_v18 = vadd.f32 %v875_v16, %v549_v15 }
 0x102   :  { %v509_v20 = vpop.f32.mrf.mxu1 }
 0x103   :  { %v564_v21 = vadd.f32 %v548_v17, %v509_v20  ;;  %876 = vmatprep.subr.mxu0 %v565_v18 }
 0x104   :  { %877 = vmatpush3.xpose.msra.mxu0 %v565_v18 }
 0x105   :  { %878 = vmatprep.subr.mxu0 %v564_v21 }
 0x108   :  { %879 = vmatpush3.xpose.msra.mxu0 %v564_v21 }
 0x109   :  { %880 = vmatprep.subr.mxu0 %v563_v24 }
 0x10c   :  { %881 = vmatpush3.xpose.msra.mxu0 %v563_v24 }
 0x10d   :  { %882 = vmatprep.subr.mxu0 %v562_v27 }
 0x110   :  { %883 = vmatpush3.xpose.msra.mxu0 %v562_v27 }
 0x111   :  { %884 = vmatprep.subr.mxu0 %v561_v30 }
 0x114   :  { %885 = vmatpush3.xpose.msra.mxu0 %v561_v30 }
 0x115   :  { %886 = vmatprep.subr.mxu0 %v560_v33 }
 0x118   :  { %887 = vmatpush3.xpose.msra.mxu0 %v560_v33 }
 0x119   :  { %888 = vmatprep.subr.mxu0 %v559_v36 }
 0x11c   :  { %889 = vmatpush3.xpose.msra.mxu0 %v559_v36 }
 0x11d   :  { %890 = vmatprep.subr.mxu0 %v558_v45 }
 0x120   :  { %891 = vmatpush3.xpose.msra.mxu0 %v558_v45 }
 0x121   :  { %892 = vmatprep.subr.mxu0 %v557_v47 }
 0x124   :  { %893 = vmatpush3.xpose.msra.mxu0 %v557_v47 }
 0x125   :  { %894 = vmatprep.subr.mxu0 %v556_v49 }
 0x128   :  { %895 = vmatpush3.xpose.msra.mxu0 %v556_v49 }
 0x129   :  { %896 = vmatprep.subr.mxu0 %v555_v51 }
 0x12c   :  { %897 = vmatpush3.xpose.msra.mxu0 %v555_v51 }
 0x12d   :  { %898 = vmatprep.subr.mxu0 %v554_v42 }
 0x130   :  { %899 = vmatpush3.xpose.msra.mxu0 %v554_v42 }
 0x131   :  { %900 = vmatprep.subr.mxu0 %v1144_v0 }
 0x134   :  { %901 = vmatpush3.xpose.msra.mxu0 %v1144_v0 }
 0x135   :  { %902 = vmatprep.subr.mxu0 %v1146_v2 }
 0x138   :  { %903 = vmatpush3.xpose.msra.mxu0 %v1146_v2 }
 0x139   :  { %904 = vmatprep.subr.mxu0 %v1137_v57 }
 0x13c   :  { %905 = vmatpush3.xpose.msra.mxu0 %v1137_v57 }
 0x13d   :  { %906 = vmatprep.subr.mxu0 %v1142_v61 }
 0x140   :  { %907 = vmatpush3.xpose.msra.mxu0 %v1142_v61 }
 0x143   :  { %909 = vmatmul.mubr.f32.vlgmr.msra.gmra.mxu0 %v600_v39 }
 0x203   :  { %v910_v53 = vpop.f32.mrf.mxu0 }
 0x204   :  { %v695_v54 = vadd.f32 %v910_v53, %v771_v40 }
 0x205   :  { %v685_v55 = vpop.f32.mrf.mxu0 }
 0x206   :  { %704 = vst [vmem:[#allocation4 + $0x8] sm:$0xff] %v695_v54  ;;  %v694_v56 = vadd.f32 %v771_v40, %v685_v55 }
 0x208   :  { %703 = vst [vmem:[#allocation4] sm:$0xff] %v694_v56 }
 0x209   :  { %925 = shalt.err (!%p922_p4)
}
 0x20a   :  { %s937_s0 = smov 128   ;;  %s938_s27 = smov 8  }
 0x20b   :  { %716 = dma.vmem_to_hbm [thread:$0]  %s711_s25, 256, %s1220_s7, [#allocation5], %s937_s0, %s937_s0, %s938_s27  }
 0x20c   :  { %934 = dma.done.wait [#allocation5], 256  }
 0x20d   :  { %935 = vsyncadd [#allocation5], 4294967040 }
 0x20e   :  { %720 = vsyncpa [#allocation5], 1 }

</bundles_post_ra>
